<compile_context>
chip_gen: v6e
topology: v6e:2x2x1
jax: 0.10.0
libtpu: 0.0.40
codegen_flags: <defaults>
</compile_context>

<pallas_src>
import functools
import math

import jax
import jax.numpy as jnp
from jax import lax
from jax.experimental import pallas as pl
from jax.experimental.pallas import tpu as pltpu


_VMEM_LIMIT = 32 * 1024 * 1024  # scoped-VMEM budget safe on v5e / v6e / v7x


def _pick_tile(dim, target, align):
    """Largest tile <= target that is a multiple of `align` and divides `dim`.

    Falls back to the full dimension (always a legal BlockSpec block size)."""
    if dim <= target:
        return dim
    t = (target // align) * align
    while t >= align:
        if dim % t == 0:
            return t
        t -= align
    return dim


# ----------------------------------------------------------------------------
# Kernel 1: tiled linear projection  y = x @ W + b
#   grid = (N/TM, Dout/TN, Din/TK); f32 accumulator scratch; bias fused into
#   the finalize step on the last K iteration; operands cast to compute_dtype.
# ----------------------------------------------------------------------------
def _linear_kernel(x_ref, w_ref, b_ref, o_ref, acc_ref, *, compute_dtype):
    k = pl.program_id(2)

    @pl.when(k == 0)
    def _():
        acc_ref[...] = jnp.zeros_like(acc_ref)

    acc_ref[...] += jnp.dot(
        x_ref[...].astype(compute_dtype),
        w_ref[...].astype(compute_dtype),
        preferred_element_type=jnp.float32,
    )

    @pl.when(k == pl.num_programs(2) - 1)
    def _():
        o_ref[...] = (acc_ref[...] + b_ref[...].astype(jnp.float32)).astype(
            o_ref.dtype
        )


def linear(x, w, b, *, compute_dtype=jnp.bfloat16, tm=256, tn=256, tk=512):
    """x: (N, Din); w: (Din, Dout); b: (Dout,)  ->  (N, Dout)."""
    n, din = x.shape
    dout = w.shape[1]
    TM = _pick_tile(n, tm, 8)
    TN = _pick_tile(dout, tn, 128)
    TK = _pick_tile(din, tk, 128)
    kernel = functools.partial(_linear_kernel, compute_dtype=compute_dtype)
    return pl.pallas_call(
        kernel,
        out_shape=jax.ShapeDtypeStruct((n, dout), x.dtype),
        grid=(n // TM, dout // TN, din // TK),
        in_specs=[
            pl.BlockSpec((TM, TK), lambda i, j, k: (i, k)),
            pl.BlockSpec((TK, TN), lambda i, j, k: (k, j)),
            pl.BlockSpec((1, TN), lambda i, j, k: (0, j)),
        ],
        out_specs=pl.BlockSpec((TM, TN), lambda i, j, k: (i, j)),
        scratch_shapes=[pltpu.VMEM((TM, TN), jnp.float32)],
        compiler_params=pltpu.CompilerParams(
            dimension_semantics=("parallel", "parallel", "arbitrary"),
            vmem_limit_bytes=_VMEM_LIMIT,
        ),
    )(x, w, b.reshape(1, dout))


# ----------------------------------------------------------------------------
# Kernel 2: fused Q/K/V projection  [q|k|v] = x @ [wq|wk|wv] + [bq|bk|bv]
#   One matmul over the concatenated weight (x read once, wide MXU N), and the
#   three outputs are written directly from the finalize -> no extra HBM slice
#   copies between the projection and the attention kernel.
# ----------------------------------------------------------------------------
def _qkv_proj_kernel(x_ref, w_ref, b_ref, q_ref, k_ref, v_ref, acc_ref, *,
                     d, compute_dtype):
    kk = pl.program_id(1)

    @pl.when(kk == 0)
    def _():
        acc_ref[...] = jnp.zeros_like(acc_ref)

    acc_ref[...] += jnp.dot(
        x_ref[...].astype(compute_dtype),
        w_ref[...].astype(compute_dtype),
        preferred_element_type=jnp.float32,
    )

    @pl.when(kk == pl.num_programs(1) - 1)
    def _():
        out = acc_ref[...] + b_ref[...].astype(jnp.float32)
        q_ref[...] = out[:, :d].astype(q_ref.dtype)
        k_ref[...] = out[:, d:2 * d].astype(k_ref.dtype)
        v_ref[...] = out[:, 2 * d:].astype(v_ref.dtype)


def qkv_projection(x, w_qkv, b_qkv, d, *, compute_dtype=jnp.bfloat16,
                   tm=256, tk=512):
    """x: (N, Din); w_qkv: (Din, 3d); b_qkv: (3d,) -> (q, k, v) each (N, d)."""
    n, din = x.shape
    TM = _pick_tile(n, tm, 8)
    TK = _pick_tile(din, tk, 128)
    kernel = functools.partial(_qkv_proj_kernel, d=d, compute_dtype=compute_dtype)
    out_sds = jax.ShapeDtypeStruct((n, d), x.dtype)
    return pl.pallas_call(
        kernel,
        out_shape=(out_sds, out_sds, out_sds),
        grid=(n // TM, din // TK),
        in_specs=[
            pl.BlockSpec((TM, TK), lambda i, k: (i, k)),
            pl.BlockSpec((TK, 3 * d), lambda i, k: (k, 0)),
            pl.BlockSpec((1, 3 * d), lambda i, k: (0, 0)),
        ],
        out_specs=(
            pl.BlockSpec((TM, d), lambda i, k: (i, 0)),
            pl.BlockSpec((TM, d), lambda i, k: (i, 0)),
            pl.BlockSpec((TM, d), lambda i, k: (i, 0)),
        ),
        scratch_shapes=[pltpu.VMEM((TM, 3 * d), jnp.float32)],
        compiler_params=pltpu.CompilerParams(
            dimension_semantics=("parallel", "arbitrary"),
            vmem_limit_bytes=_VMEM_LIMIT,
        ),
    )(x, w_qkv, b_qkv.reshape(1, 3 * d))


# ----------------------------------------------------------------------------
# Kernel 3: multi-head scaled dot-product attention + fused output projection.
#   q: (1, TL, H*E), k/v: (1, S, H*E), wo: (H*E, d_model), bo: (1, d_model)
#   -> o: (1, TL, d_model)  (lane-dense store, out-proj consumes the slab in
#   VMEM so the attention output never hits HBM).
# ----------------------------------------------------------------------------
def _mha_out_kernel(q_ref, k_ref, v_ref, wo_ref, bo_ref, o_ref, slab_ref, *,
                    n_heads, head_dim, scale, compute_dtype):
    q = q_ref[0]  # (TL, H*E)
    k = k_ref[0]  # (S,  H*E)
    v = v_ref[0]  # (S,  H*E)
    for h in range(n_heads):  # static unroll; per-head stores bound live ranges
        lo = h * head_dim
        hi = lo + head_dim
        # pre-scale the (TL, E) q tile (cheaper than scaling (TL, S) scores)
        q_h = (q[:, lo:hi].astype(jnp.float32) * scale).astype(compute_dtype)
        k_h = k[:, lo:hi].astype(compute_dtype)
        v_h = v[:, lo:hi].astype(compute_dtype)
        # contract the last dims directly: no materialized K transpose
        s = lax.dot_general(
            q_h, k_h,
            dimension_numbers=(((1,), (1,)), ((), ())),
            preferred_element_type=jnp.float32,
        )  # (TL, S)
        m = jnp.max(s, axis=-1, keepdims=True)
        p = jnp.exp(s - m)
        denom = jnp.sum(p, axis=-1, keepdims=True)
        o_h = jnp.dot(p.astype(compute_dtype), v_h,
                      preferred_element_type=jnp.float32)  # (TL, E)
        slab_ref[:, lo:hi] = o_h * pl.reciprocal(denom, approx=True)
    # fused output projection on the lane-dense (TL, H*E) VMEM slab
    proj = jnp.dot(
        slab_ref[...].astype(compute_dtype),
        wo_ref[...].astype(compute_dtype),
        preferred_element_type=jnp.float32,
    )  # (TL, d_model)
    o_ref[0] = (proj + bo_ref[...].astype(jnp.float32)).astype(o_ref.dtype)


def mha_with_out_proj(q, k, v, wo, bo, n_heads, *, compute_dtype=jnp.bfloat16,
                      tl=256):
    """q: (B, L, H*E); k, v: (B, S, H*E); wo: (H*E, dm); bo: (dm,) -> (B, L, dm)."""
    B, L, D = q.shape
    _, S, _ = k.shape
    d_out = wo.shape[1]
    E = D // n_heads
    TL = _pick_tile(L, tl, 8)
    kernel = functools.partial(
        _mha_out_kernel, n_heads=n_heads, head_dim=E,
        scale=1.0 / math.sqrt(E), compute_dtype=compute_dtype)
    return pl.pallas_call(
        kernel,
        out_shape=jax.ShapeDtypeStruct((B, L, d_out), q.dtype),
        grid=(B, L // TL),
        in_specs=[
            pl.BlockSpec((1, TL, D), lambda b, i: (b, i, 0)),
            pl.BlockSpec((1, S, D), lambda b, i: (b, 0, 0)),
            pl.BlockSpec((1, S, D), lambda b, i: (b, 0, 0)),
            pl.BlockSpec((D, d_out), lambda b, i: (0, 0)),
            pl.BlockSpec((1, d_out), lambda b, i: (0, 0)),
        ],
        out_specs=pl.BlockSpec((1, TL, d_out), lambda b, i: (b, i, 0)),
        scratch_shapes=[pltpu.VMEM((TL, D), jnp.float32)],
        compiler_params=pltpu.CompilerParams(
            dimension_semantics=("parallel", "parallel"),
            vmem_limit_bytes=_VMEM_LIMIT,
        ),
    )(q, k, v, wo, bo.reshape(1, d_out))


# ----------------------------------------------------------------------------
# AttentionLayer parameters / forward
# ----------------------------------------------------------------------------
def init_attention_layer_params(key, d_model, n_heads, dtype=jnp.float32):
    d_keys = d_model // n_heads
    keys = jax.random.split(key, 8)

    def _w(k, fan_in, fan_out):
        bound = 1.0 / math.sqrt(fan_in)
        return jax.random.uniform(k, (fan_in, fan_out), dtype, -bound, bound)

    def _b(k, fan_in, fan_out):
        bound = 1.0 / math.sqrt(fan_in)
        return jax.random.uniform(k, (fan_out,), dtype, -bound, bound)

    p = {
        "wq": _w(keys[0], d_model, d_keys * n_heads),
        "bq": _b(keys[1], d_model, d_keys * n_heads),
        "wk": _w(keys[2], d_model, d_keys * n_heads),
        "bk": _b(keys[3], d_model, d_keys * n_heads),
        "wv": _w(keys[4], d_model, d_keys * n_heads),
        "bv": _b(keys[5], d_model, d_keys * n_heads),
        "wo": _w(keys[6], d_keys * n_heads, d_model),
        "bo": _b(keys[7], d_keys * n_heads, d_model),
    }
    # Hoisted fused Q/K/V weights: concatenated ONCE here, never per forward.
    p["w_qkv"] = jnp.concatenate([p["wq"], p["wk"], p["wv"]], axis=1)
    p["b_qkv"] = jnp.concatenate([p["bq"], p["bk"], p["bv"]])
    return p


def attention_layer_forward(params, queries, keys, values, n_heads, *,
                            compute_dtype=jnp.bfloat16, fuse_qkv=None):
    B, L, d_model = queries.shape
    _, S, _ = keys.shape
    assert d_model % n_heads == 0

    if fuse_qkv is None:
        # Fuse the three projections only when all inputs are literally the
        # same array (self-attention). Callers may force it explicitly.
        fuse_qkv = (queries is keys) and (keys is values)

    if fuse_qkv:
        q2, k2, v2 = qkv_projection(
            queries.reshape(B * L, d_model), params["w_qkv"], params["b_qkv"],
            d_model, compute_dtype=compute_dtype)
        q = q2.reshape(B, L, d_model)
        k = k2.reshape(B, L, d_model)
        v = v2.reshape(B, L, d_model)
    else:
        q = linear(queries.reshape(B * L, d_model), params["wq"], params["bq"],
                   compute_dtype=compute_dtype).reshape(B, L, d_model)
        k = linear(keys.reshape(B * S, d_model), params["wk"], params["bk"],
                   compute_dtype=compute_dtype).reshape(B, S, d_model)
        v = linear(values.reshape(B * S, d_model), params["wv"], params["bv"],
                   compute_dtype=compute_dtype).reshape(B, S, d_model)

    # Heads split/merged in-kernel; output projection fused into the finalize.
    return mha_with_out_proj(q, k, v, params["wo"], params["bo"], n_heads,
                             compute_dtype=compute_dtype)


# ----------------------------------------------------------------------------
# Pure-JAX reference.
# ----------------------------------------------------------------------------
def reference_forward(params, queries, keys, values, n_heads):
    B, L, d_model = queries.shape
    _, S, _ = keys.shape
    H = n_heads
    E = d_model // H
    q = queries @ params["wq"] + params["bq"]
    k = keys @ params["wk"] + params["bk"]
    v = values @ params["wv"] + params["bv"]
    q = q.reshape(B, L, H, E)
    k = k.reshape(B, S, H, E)
    v = v.reshape(B, S, H, E)
    s = jnp.einsum("blhe,bshe->bhls", q, k) / math.sqrt(E)
    p = jax.nn.softmax(s, axis=-1)
    o = jnp.einsum("bhls,bshe->blhe", p, v).reshape(B, L, H * E)
    return o @ params["wo"] + params["bo"]


if __name__ == "__main__":
    d_model, n_heads = 32, 4
    key = jax.random.PRNGKey(0)
    kx, kq, kk_, kv, kp = jax.random.split(key, 5)
    params = init_attention_layer_params(kp, d_model, n_heads)

    # 1) self-attention, f32 MXU path (strict tolerance): fused QKV projection
    #    + fused output projection.
    B, L = 2, 8
    x = jax.random.normal(kx, (B, L, d_model), jnp.float32)
    ref_self = reference_forward(params, x, x, x, n_heads)
    out_f32 = jax.block_until_ready(
        attention_layer_forward(params, x, x, x, n_heads,
                                compute_dtype=jnp.float32))
    assert out_f32.shape == (B, L, d_model)
    assert jnp.allclose(out_f32, ref_self, atol=2e-3, rtol=2e-3), (
        "self-attention (f32) mismatch, max |diff| = "
        f"{float(jnp.max(jnp.abs(out_f32 - ref_self))):.3e}"
    )

    # 2) self-attention, default bf16 MXU path (looser tolerance).
    out_bf16 = jax.block_until_ready(
        attention_layer_forward(params, x, x, x, n_heads))
    assert jnp.allclose(out_bf16, ref_self, atol=2.5e-2, rtol=2.5e-2), (
        "self-attention (bf16) mismatch, max |diff| = "
        f"{float(jnp.max(jnp.abs(out_bf16 - ref_self))):.3e}"
    )

    # 3) cross-attention (L != S, distinct inputs): separate projections.
    S = 16
    queries = jax.random.normal(kq, (B, L, d_model), jnp.float32)
    keys_in = jax.random.normal(kk_, (B, S, d_model), jnp.float32)
    values_in = jax.random.normal(kv, (B, S, d_model), jnp.float32)
    out_cross = jax.block_until_ready(
        attention_layer_forward(params, queries, keys_in, values_in, n_heads))
    ref_cross = reference_forward(params, queries, keys_in, values_in, n_heads)
    assert out_cross.shape == (B, L, d_model)
    assert jnp.allclose(out_cross, ref_cross, atol=2.5e-2, rtol=2.5e-2), (
        "cross-attention mismatch, max |diff| = "
        f"{float(jnp.max(jnp.abs(out_cross - ref_cross))):.3e}"
    )

    print("KERNEL_OK")
</pallas_src>

<mosaic_0001>
module attributes {stable_mosaic.version = 11 : i64} {
  func.func @_qkv_proj_kernel(%arg0: i32, %arg1: i32, %arg2: memref<16x32xf32, #tpu.memory_space<vmem>>, %arg3: memref<32x96xf32, #tpu.memory_space<vmem>>, %arg4: memref<1x96xf32, #tpu.memory_space<vmem>>, %arg5: memref<16x32xf32, #tpu.memory_space<vmem>>, %arg6: memref<16x32xf32, #tpu.memory_space<vmem>>, %arg7: memref<16x32xf32, #tpu.memory_space<vmem>>, %arg8: memref<16x96xf32, #tpu.memory_space<vmem>>) attributes {dimension_semantics = [#tpu.dimension_semantics<parallel>, #tpu.dimension_semantics<arbitrary>], iteration_bounds = array<i64: 1, 1>, scalar_prefetch = 0 : i64, scratch_operands = 1 : i64, tpu.core_type = #tpu.core_type<tc>, window_params = [{transform_indices = @transform_0, window_bounds = array<i64: 16, 32>}, {transform_indices = @transform_1, window_bounds = array<i64: 32, 96>}, {pipeline_mode = #tpu.pipeline_mode<synchronous>, transform_indices = @transform_2, window_bounds = array<i64: 1, 96>}, {transform_indices = @transform_3, window_bounds = array<i64: 16, 32>}, {transform_indices = @transform_4, window_bounds = array<i64: 16, 32>}, {transform_indices = @transform_5, window_bounds = array<i64: 16, 32>}]} {
    %c0_i32 = arith.constant 0 : i32
    %0 = arith.cmpi eq, %arg1, %c0_i32 : i32
    %1 = arith.extui %0 : i1 to i32
    %c0_i32_0 = arith.constant 0 : i32
    %2 = arith.cmpi ne, %1, %c0_i32_0 : i32
    scf.if %2 {
      %cst_10 = arith.constant 0.000000e+00 : f32
      %12 = vector.broadcast %cst_10 : f32 to vector<16x96xf32>
      %c0_11 = arith.constant 0 : index
      %c0_12 = arith.constant 0 : index
      %13 = vector.load %arg8[%c0_11, %c0_12] : memref<16x96xf32, #tpu.memory_space<vmem>>, vector<16x96xf32>
      tpu.vector_store %arg8[%c0_11, %c0_12], %12 {strides = array<i32>} : memref<16x96xf32, #tpu.memory_space<vmem>>, vector<16x96xf32>,
    } else {
    }
    %c0 = arith.constant 0 : index
    %c0_1 = arith.constant 0 : index
    %3 = vector.load %arg8[%c0, %c0_1] : memref<16x96xf32, #tpu.memory_space<vmem>>, vector<16x96xf32>
    %c0_2 = arith.constant 0 : index
    %c0_3 = arith.constant 0 : index
    %4 = vector.load %arg2[%c0_2, %c0_3] : memref<16x32xf32, #tpu.memory_space<vmem>>, vector<16x32xf32>
    %c0_4 = arith.constant 0 : index
    %c0_5 = arith.constant 0 : index
    %5 = vector.load %arg3[%c0_4, %c0_5] : memref<32x96xf32, #tpu.memory_space<vmem>>, vector<32x96xf32>
    %cst = arith.constant dense<0.000000e+00> : vector<16x96xf32>
    %6 = tpu.matmul %4, %5, %cst {dimension_numbers = #tpu.dot_dimension_numbers<[1], [0], [0], [1], [0, 0, 1, 1], [], []>} : vector<16x32xf32>, vector<32x96xf32>, vector<16x96xf32> -> vector<16x96xf32>
    %7 = arith.addf %3, %6 : vector<16x96xf32>
    %c0_6 = arith.constant 0 : index
    %c0_7 = arith.constant 0 : index
    %8 = vector.load %arg8[%c0_6, %c0_7] : memref<16x96xf32, #tpu.memory_space<vmem>>, vector<16x96xf32>
    tpu.vector_store %arg8[%c0_6, %c0_7], %7 {strides = array<i32>} : memref<16x96xf32, #tpu.memory_space<vmem>>, vector<16x96xf32>,
    %c0_i32_8 = arith.constant 0 : i32
    %9 = arith.cmpi eq, %arg1, %c0_i32_8 : i32
    %10 = arith.extui %9 : i1 to i32
    %c0_i32_9 = arith.constant 0 : i32
    %11 = arith.cmpi ne, %10, %c0_i32_9 : i32
    scf.if %11 {
      %c0_10 = arith.constant 0 : index
      %c0_11 = arith.constant 0 : index
      %12 = vector.load %arg8[%c0_10, %c0_11] : memref<16x96xf32, #tpu.memory_space<vmem>>, vector<16x96xf32>
      %c0_12 = arith.constant 0 : index
      %c0_13 = arith.constant 0 : index
      %13 = vector.load %arg4[%c0_12, %c0_13] : memref<1x96xf32, #tpu.memory_space<vmem>>, vector<1x96xf32>
      %14 = vector.broadcast %13 : vector<1x96xf32> to vector<16x96xf32>
      %15 = arith.addf %12, %14 : vector<16x96xf32>
      %16 = vector.extract_strided_slice %15 {offsets = [0, 0], sizes = [16, 32], strides = [1, 1]} : vector<16x96xf32> to vector<16x32xf32>
      %c0_14 = arith.constant 0 : index
      %c0_15 = arith.constant 0 : index
      %17 = vector.load %arg5[%c0_14, %c0_15] : memref<16x32xf32, #tpu.memory_space<vmem>>, vector<16x32xf32>
      tpu.vector_store %arg5[%c0_14, %c0_15], %16 {strides = array<i32>} : memref<16x32xf32, #tpu.memory_space<vmem>>, vector<16x32xf32>,
      %18 = vector.extract_strided_slice %15 {offsets = [0, 32], sizes = [16, 32], strides = [1, 1]} : vector<16x96xf32> to vector<16x32xf32>
      %c0_16 = arith.constant 0 : index
      %c0_17 = arith.constant 0 : index
      %19 = vector.load %arg6[%c0_16, %c0_17] : memref<16x32xf32, #tpu.memory_space<vmem>>, vector<16x32xf32>
      tpu.vector_store %arg6[%c0_16, %c0_17], %18 {strides = array<i32>} : memref<16x32xf32, #tpu.memory_space<vmem>>, vector<16x32xf32>,
      %20 = vector.extract_strided_slice %15 {offsets = [0, 64], sizes = [16, 32], strides = [1, 1]} : vector<16x96xf32> to vector<16x32xf32>
      %c0_18 = arith.constant 0 : index
      %c0_19 = arith.constant 0 : index
      %21 = vector.load %arg7[%c0_18, %c0_19] : memref<16x32xf32, #tpu.memory_space<vmem>>, vector<16x32xf32>
      tpu.vector_store %arg7[%c0_18, %c0_19], %20 {strides = array<i32>} : memref<16x32xf32, #tpu.memory_space<vmem>>, vector<16x32xf32>,
    } else {
    }
    return
  }
  func.func @transform_0(%arg0: i32, %arg1: i32) -> (i32, i32) {
    %c0_i32 = arith.constant 0 : i32
    return %arg0, %arg1 : i32, i32
  }
  func.func @transform_1(%arg0: i32, %arg1: i32) -> (i32, i32) {
    %c0_i32 = arith.constant 0 : i32
    %c0_i32_0 = arith.constant 0 : i32
    return %arg1, %c0_i32 : i32, i32
  }
  func.func @transform_2(%arg0: i32, %arg1: i32) -> (i32, i32) {
    %c0_i32 = arith.constant 0 : i32
    %c0_i32_0 = arith.constant 0 : i32
    %c0_i32_1 = arith.constant 0 : i32
    return %c0_i32, %c0_i32_0 : i32, i32
  }
  func.func @transform_3(%arg0: i32, %arg1: i32) -> (i32, i32) {
    %c0_i32 = arith.constant 0 : i32
    %c0_i32_0 = arith.constant 0 : i32
    return %arg0, %c0_i32 : i32, i32
  }
  func.func @transform_4(%arg0: i32, %arg1: i32) -> (i32, i32) {
    %c0_i32 = arith.constant 0 : i32
    %c0_i32_0 = arith.constant 0 : i32
    return %arg0, %c0_i32 : i32, i32
  }
  func.func @transform_5(%arg0: i32, %arg1: i32) -> (i32, i32) {
    %c0_i32 = arith.constant 0 : i32
    %c0_i32_0 = arith.constant 0 : i32
    return %arg0, %c0_i32 : i32, i32
  }
}

</mosaic_0001>

<bundles_post_ra>
// kernel: tpu_custom_call.1
= control target key start
LH: loop header
LB: loop body
LE: loop exit
PB: predicated region body
PF: predicated region fallthrough
CT: control target
= control target key end

     0   :  { %11 = vsyncpa [#allocation4], 0  ;;  %s455_s0 = inlined_call_operand.hbm [shape: f32[16,32], index: 0, kind: input, shape index: {}]   ;;  %s456_s1 = inlined_call_operand.hbm [shape: f32[32,96], index: 1, kind: input, shape index: {}]   ;;  %s457_s2 = inlined_call_operand.vmem [shape: f32[1,96], index: 2, kind: input, shape index: {}]   ;;  %s458_s3 = inlined_call_operand.hbm [shape: f32[16,32], index: 3, kind: output, shape index: {0}]   ;;  %s459_s4 = inlined_call_operand.hbm [shape: f32[16,32], index: 4, kind: output, shape index: {1}]   ;;  %s460_s5 = inlined_call_operand.hbm [shape: f32[16,32], index: 5, kind: output, shape index: {2}]  }
   0x1   :  { %12 = vsyncpa [#allocation7], 0 }
   0x2   :  { %13 = vsyncpa [#allocation5], 0 }
   0x3   :  { %14 = vsyncpa [#allocation10], 0  ;;  %s370_s18 = smov [#allocation3]  }
   0x4   :  { %s20_s19 = sshll.u32 %s370_s18, 4  ;;  %s21_s19 = int_to_ptr.vmem [resolvable:$true] %s20_s19 }
   0x5   :  { %s270_s20 = scalar_lea.vmem %s21_s19, 256  ;;  %p275_p1 = scmp.lt.s32.totalorder %s21_s19, %s21_s19 }
   0x6   :  { %p271_p0 = scmp.ne.s32.totalorder %s21_s19, %s270_s20  ;;  %p276_p2 = scmp.lt.s32.totalorder %s270_s20, %s270_s20 }
   0x8   :  { %p277_p3 = por %p276_p2, %p275_p1 }
   0xa   :  { %p278_p4 = pnand %p277_p3, %p271_p0 }
   0xc   :  { %281 = shalt.err (!%p278_p4)
}
   0xd   :  { %s371_s21 = smov 128   ;;  %s372_s22 = smov 8  }
   0xe   :  { %26 = dma.hbm_to_vmem [thread:$0]  %s455_s0, 256, %s21_s19, [#allocation4], %s371_s21, %s371_s21, %s372_s22  }
   0xf   :  { %s373_s25 = smov [#allocation6]  }
  0x10   :  { %s32_s26 = sshll.u32 %s373_s25, 4  ;;  %s33_s26 = int_to_ptr.vmem [resolvable:$true] %s32_s26 }
  0x11   :  { %s290_s27 = scalar_lea.vmem %s33_s26, 512  ;;  %p295_p6 = scmp.lt.s32.totalorder %s33_s26, %s33_s26 }
  0x12   :  { %p291_p5 = scmp.ne.s32.totalorder %s33_s26, %s290_s27  ;;  %p296_p7 = scmp.lt.s32.totalorder %s290_s27, %s290_s27 }
  0x14   :  { %p297_p8 = por %p296_p7, %p295_p6 }
  0x16   :  { %p298_p9 = pnand %p297_p8, %p291_p5 }
  0x18   :  { %301 = shalt.err (!%p298_p9)
}
  0x19   :  { %38 = dma.hbm_to_vmem [thread:$0]  %s456_s1, 512, %s33_s26, [#allocation7], %s371_s21, %s371_s21, %s372_s22  }
  0x1a   :  { %362 = dma.done.wait [#allocation4], 256  }
  0x1b   :  { %363 = vsyncadd [#allocation4], 4294967040 }
  0x1c   :  { %364 = dma.done.wait [#allocation7], 512  }
  0x1d   :  { %365 = vsyncadd [#allocation7], 4294966784  ;;  %vm51_vm0 = vcmask 785408   ;;  %v374_v0 = vmov 0.0   ;;  %vm62_vm1 = vcmask 261120   ;;  %v61_v1 = vld [vmem:[#allocation6 + $0x18] sm:$0xff] }
  0x1e   :  { %53 = vst.msk [vmem:[#allocation2 + $0x8] sm:$0xff] %vm51_vm0, %v374_v0  ;;  %52 = vst.msk [vmem:[#allocation2] sm:$0xff] %vm51_vm0, %v374_v0  ;;  %v60_v2 = vld [vmem:[#allocation6 + $0x10] sm:$0xff]  ;;  %241 = vmatprep.subr.mxu0 %v61_v1  ;;  %v59_v4 = vld [vmem:[#allocation6 + $0x8] sm:$0xff]  ;;  %s375_s30 = smov [#allocation8]   ;;  %s376_s7 = smov 64  }
  0x1f   :  { %v56_v3 = vld [vmem:[#allocation3] sm:$0xff]  ;;  %242 = vmatpush3.msra.mxu0 %v61_v1  ;;  %v58_v5 = vld [vmem:[#allocation6] sm:$0xff]  ;;  %v57_v6 = vld [vmem:[#allocation3 + $0x8] sm:$0xff]  ;;  %s188_s6 = sshll.u32 %s375_s30, 4  ;;  %s377_s8 = smov 96   ;;  %s189_s6 = int_to_ptr.vmem [resolvable:$true] %s188_s6 }
  0x20   :  { %249 = vmatprep.mubr.msk.f32.mxu0 %vm62_vm1, %v56_v3  ;;  %243 = vmatprep.subr.mxu0 %v60_v2  ;;  %v234_v13 = vld [vmem:[%s457_s2] ss:$0 sm:$0xff]  ;;  %s302_s9 = scalar_lea.vmem %s189_s6, 256  ;;  %p307_p11 = scmp.lt.s32.totalorder %s189_s6, %s189_s6 }
  0x21   :  { %244 = vmatpush3.msra.mxu0 %v60_v2  ;;  %p303_p10 = scmp.ne.s32.totalorder %s189_s6, %s302_s9  ;;  %p308_p12 = scmp.lt.s32.totalorder %s302_s9, %s302_s9 }
  0x22   :  { %245 = vmatprep.subr.mxu0 %v59_v4 }
  0x23   :  { %246 = vmatpush3.msra.mxu0 %v59_v4  ;;  %p309_p13 = por %p308_p12, %p307_p11 }
  0x24   :  { %247 = vmatprep.subr.mxu0 %v58_v5 }
  0x25   :  { %248 = vmatpush3.msra.mxu0 %v58_v5  ;;  %v55_v7 = vld [vmem:[#allocation2 + $0x8] sm:$0xff]  ;;  %v54_v9 = vld [vmem:[#allocation2] sm:$0xff]  ;;  %p310_p0 = pnand %p309_p13, %p303_p10 }
  0x26   :  { %250 = vmatmul.mubr.msk.f32.vlgmr.msra.gmra.mxu0 %vm62_vm1, %v57_v6 }
  0xe6   :  { %v251_v8 = vpop.f32.mrf.mxu0 }
  0xe7   :  { %v145_v10 = vadd.f32 %v251_v8, %v55_v7 }
  0xe8   :  { %v135_v11 = vpop.f32.mrf.mxu0 }
  0xe9   :  { %148 = vst.msk [vmem:[#allocation2 + $0x8] sm:$0xff] %vm51_vm0, %v145_v10  ;;  %v144_v12 = vadd.f32 %v135_v11, %v54_v9 }
  0xeb   :  { %147 = vst.msk [vmem:[#allocation2] sm:$0xff] %vm51_vm0, %v144_v12 }
  0xf0   :  { %v153_v14 = vld [vmem:[#allocation2 + $0x8] sm:$0xff] }
  0xf1   :  { %v162_v15 = vadd.f32 %v234_v13, %v153_v14 }
  0xf2   :  { %v152_v16 = vld [vmem:[#allocation2] sm:$0xff] }
  0xf3   :  { %v161_v17 = vadd.f32 %v234_v13, %v152_v16  ;;  %164 = vst.msk [vmem:[#allocation8 + $0x8] sm:$0xff] %vm62_vm1, %v162_v15 }
  0xf5   :  { %175 = vrot.lane.b32.xlu1 %v161_v17, %s376_s7  ;;  %163 = vst.msk [vmem:[#allocation8] sm:$0xff] %vm62_vm1, %v161_v17  ;;  %167 = vrot.lane.b32.xlu0 %v161_v17, %s377_s8 }
  0xf6   :  { %313 = shalt.err (!%p310_p0)
}
  0xf7   :  { %194 = dma.vmem_to_hbm [thread:$0]  %s189_s6, 256, %s458_s3, [#allocation5], %s371_s21, %s371_s21, %s372_s22  }
  0xf8   :  { %s378_s11 = smov [#allocation9]   ;;  %s379_s13 = smov [#allocation11]  }
  0xf9   :  { %177 = vrot.lane.b32.xlu1 %v162_v15, %s376_s7  ;;  %169 = vrot.lane.b32.xlu0 %v162_v15, %s377_s8  ;;  %s200_s12 = sshll.u32 %s378_s11, 4  ;;  %s212_s14 = sshll.u32 %s379_s13, 4  ;;  %s201_s12 = int_to_ptr.vmem [resolvable:$true] %s200_s12  ;;  %s213_s14 = int_to_ptr.vmem [resolvable:$true] %s212_s14 }
  0xfa   :  { %s322_s3 = scalar_lea.vmem %s201_s12, 256  ;;  %p327_p2 = scmp.lt.s32.totalorder %s201_s12, %s201_s12 }
  0xfb   :  { %p323_p1 = scmp.ne.s32.totalorder %s201_s12, %s322_s3  ;;  %p328_p3 = scmp.lt.s32.totalorder %s322_s3, %s322_s3 }
  0xfd   :  { %p329_p4 = por %p328_p3, %p327_p2 }
  0xff   :  { %p330_p5 = pnand %p329_p4, %p323_p1 }
 0x167   :  { %v176_v18 = vpop.permute.xlu1 %175  ;;  %v168_v19 = vpop.permute.xlu0 %167 }
 0x168   :  { %181 = vst.msk [vmem:[#allocation11] sm:$0xff] %vm62_vm1, %v176_v18  ;;  %173 = vst.msk [vmem:[#allocation9] sm:$0xff] %vm62_vm1, %v168_v19 }
 0x16b   :  { %v178_v20 = vpop.permute.xlu1 %177  ;;  %v170_v21 = vpop.permute.xlu0 %169 }
 0x16c   :  { %182 = vst.msk [vmem:[#allocation11 + $0x8] sm:$0xff] %vm62_vm1, %v178_v20  ;;  %174 = vst.msk [vmem:[#allocation9 + $0x8] sm:$0xff] %vm62_vm1, %v170_v21 }
 0x16d   :  { %333 = shalt.err (!%p330_p5)
}
 0x16e   :  { %206 = dma.vmem_to_hbm [thread:$0]  %s201_s12, 256, %s459_s4, [#allocation10], %s371_s21, %s371_s21, %s372_s22  }
 0x16f   :  { %s342_s17 = scalar_lea.vmem %s213_s14, 256  ;;  %p347_p7 = scmp.lt.s32.totalorder %s213_s14, %s213_s14 }
 0x170   :  { %p343_p6 = scmp.ne.s32.totalorder %s213_s14, %s342_s17  ;;  %p348_p8 = scmp.lt.s32.totalorder %s342_s17, %s342_s17 }
 0x172   :  { %p349_p9 = por %p348_p8, %p347_p7 }
 0x174   :  { %p350_p10 = pnand %p349_p9, %p343_p6 }
 0x176   :  { %353 = shalt.err (!%p350_p10)
}
 0x177   :  { %218 = dma.vmem_to_hbm [thread:$0]  %s213_s14, 256, %s460_s5, [#allocation10], %s371_s21, %s371_s21, %s372_s22  }
 0x178   :  { %366 = dma.done.wait [#allocation5], 256  }
 0x179   :  { %367 = vsyncadd [#allocation5], 4294967040 }
 0x17a   :  { %368 = dma.done.wait [#allocation10], 512  }
 0x17b   :  { %369 = vsyncadd [#allocation10], 4294966784 }
 0x17c   :  { %228 = vsyncpa [#allocation4], 1 }
 0x17d   :  { %229 = vsyncpa [#allocation7], 1 }
 0x17e   :  { %230 = vsyncpa [#allocation5], 1 }
 0x17f   :  { %231 = vsyncpa [#allocation10], 1 }

</bundles_post_ra>
